<compile_context>
chip_gen: v7x
topology: tpu7x:2x2x1
jax: 0.10.0
libtpu: 0.0.40
codegen_flags: <defaults>
</compile_context>

<pallas_src>
import functools

import jax
import jax.numpy as jnp
import numpy as np
from jax import lax
from jax.experimental import pallas as pl
from jax.experimental.pallas import tpu as pltpu


def _rel_attn_kernel(T, B, H, Hd, lane_shifts,
                     x_ref, pos_ref,
                     in_w_ref, in_b_ref,
                     pos_w_ref, pos_b_ref,
                     out_w_ref, out_b_ref,
                     rw_ref, rr_ref,
                     bmask_ref, rotm_ref,
                     o_ref):
    """x_ref: [T*B, D] (row = t*B + b), pos_ref: [R*B, D] (row = r*B + b).
    Weights untransposed (in_w [3D, D], pos_w [D, D], out_w [D, D]); biases as
    [1, 3D] / [1, D].  bmask_ref: [B*T, B*T] additive batch mask (0 / -1e30).
    rotm_ref: [n_steps, B*T, R*B] float {0,1} row masks for the relative shift.
    Output: time-major [T*B, D]."""
    scale = Hd ** -0.5
    cT = (((1,), (1,)), ((), ()))   # contract last dims: A[m,k] . B[n,k] -> [m,n]

    x = x_ref[...]                  # [B*T, D]
    pos = pos_ref[...]              # [R*B, D]

    # Fused projections: one QKV matmul, one positional matmul (all batches/heads).
    qkv = lax.dot_general(x, in_w_ref[...], cT,
                          preferred_element_type=jnp.float32) + in_b_ref[...]    # [B*T, 3D]
    rk_all = lax.dot_general(pos, pos_w_ref[...], cT,
                             preferred_element_type=jnp.float32) + pos_b_ref[...]  # [R*B, D]

    bmask = bmask_ref[...]          # [B*T, B*T] additive (-1e30 on cross-batch)
    rw_bias = rw_ref[...]           # [H, Hd]
    rr_bias = rr_ref[...]           # [H, Hd]

    ctx_heads = []
    for h in range(H):
        # Per-head lane slices of the fused results (layout: [h][q|k|v][Hd]).
        q = qkv[:, (3 * h + 0) * Hd:(3 * h + 1) * Hd]      # [B*T, Hd]
        k = qkv[:, (3 * h + 1) * Hd:(3 * h + 2) * Hd]
        v = qkv[:, (3 * h + 2) * Hd:(3 * h + 3) * Hd]
        rk = rk_all[:, h * Hd:(h + 1) * Hd]                # [R*B, Hd]

        # Pre-scale the small query tiles instead of the score matrices.
        rw_q = scale * (q + rw_bias[h:h + 1, :])
        rr_q = scale * (q + rr_bias[h:h + 1, :])

        # Fused-over-batch score matmuls (cross-batch entries masked later).
        ac = lax.dot_general(rw_q, k, cT,
                             preferred_element_type=jnp.float32)    # [B*T, B*T]
        bd = lax.dot_general(rr_q, rk, cT,
                             preferred_element_type=jnp.float32)    # [B*T, R*B]

        # Relative shift: per-row left-rotate of bd by (T-1 - t)*B lanes
        # (t = row // B), decomposed into log2(T) masked full-width rotations.
        # Row masks are host-precomputed constants passed in VMEM.
        cur = bd
        for step, s in enumerate(lane_shifts):
            rolled = jnp.concatenate([cur[:, s:], cur[:, :s]], axis=1)
            cur = jnp.where(rotm_ref[step] > 0.5, rolled, cur)
        bd_shift = cur[:, :B * T]                          # [B*T, B*T]

        # Softmax over valid (same-batch) key columns only.
        score = ac + bd_shift + bmask
        m = jnp.max(score, axis=-1, keepdims=True)
        e = jnp.exp(score - m)
        denom = jnp.sum(e, axis=-1, keepdims=True)
        probs = e * pl.reciprocal(denom, approx=False)     # exact (EUP) reciprocal

        # Cross-batch probs are exactly 0, so the fused matmul never mixes batches.
        ctx_heads.append(jnp.dot(probs, v, preferred_element_type=jnp.float32))  # [B*T, Hd]

    ctx = ctx_heads[0] if H == 1 else jnp.concatenate(ctx_heads, axis=-1)   # [B*T, D]

    out = lax.dot_general(ctx, out_w_ref[...], cT,
                          preferred_element_type=jnp.float32) + out_b_ref[...]
    o_ref[...] = out.astype(o_ref.dtype)


def relative_self_attention(x, pos, in_w, out_w, pos_w,
                            in_b, out_b, pos_b, r_w_bias, r_r_bias, heads):
    """Matches TestAttention.forward semantics:
       use_time_mask=False, mask=None, dropout=0.0, incremental=False."""
    T, B, D = x.shape
    R = pos.shape[0]
    H = heads
    Hd = D // H
    assert H * Hd == D
    # The closed-form relative shift is exact in this regime (standard
    # bidirectional relative attention uses R = 2T - 1).
    assert R >= 2 * T - 1, "kernel's relative shift requires R >= 2*T - 1"

    # ---- host-side (numpy) constants: no in-kernel iota/compare work ----
    rows = np.arange(B * T)
    t_of_row = rows // B
    b_of_row = rows % B
    amt = (T - 1) - t_of_row                      # rotate amount in units of B lanes

    shifts = []
    s = 1
    while s < T:
        shifts.append(s)
        s *= 2
    if shifts:
        rot_masks = np.stack(
            [np.broadcast_to(((amt & s) != 0)[:, None], (B * T, R * B)).astype(np.float32)
             for s in shifts], axis=0)            # [n_steps, B*T, R*B]
    else:
        rot_masks = np.zeros((1, B * T, R * B), np.float32)
    lane_shifts = tuple(s * B for s in shifts)

    cols = np.arange(B * T)
    batch_mask = np.where(b_of_row[:, None] == (cols % B)[None, :],
                          0.0, -1e30).astype(np.float32)     # [B*T, B*T] additive

    kernel = functools.partial(_rel_attn_kernel, T, B, H, Hd, lane_shifts)

    out_flat = pl.pallas_call(
        kernel,
        out_shape=jax.ShapeDtypeStruct((T * B, D), jnp.float32),
        in_specs=[pl.BlockSpec(memory_space=pltpu.MemorySpace.VMEM)] * 12,
        out_specs=pl.BlockSpec(memory_space=pltpu.MemorySpace.VMEM),
    )(x.reshape(T * B, D), pos.reshape(R * B, D),   # free row-major reshapes
      in_w, in_b.reshape(1, 3 * D),
      pos_w, pos_b.reshape(1, D),
      out_w, out_b.reshape(1, D),
      r_w_bias, r_r_bias,
      jnp.asarray(batch_mask), jnp.asarray(rot_masks))

    return out_flat.reshape(T, B, D)              # free reshape back to [T, B, D]


def reference(x, pos, in_w, out_w, pos_w, in_b, out_b, pos_b, r_w_bias, r_r_bias, heads):
    """Plain-JAX transcription of relative_self_attn_func forward (for checking)."""
    T, B, D = x.shape
    R = pos.shape[0]
    H = heads
    Hd = D // H
    scale = Hd ** -0.5
    hp = lax.Precision.HIGHEST

    lin = jnp.einsum('tbd,ed->tbe', x, in_w, precision=hp) + in_b            # [T,B,3D]
    lin = lin.reshape(T, B * H, 3, Hd)
    q, k, v = lin[:, :, 0, :], lin[:, :, 1, :], lin[:, :, 2, :]
    rk = (jnp.einsum('rbd,ed->rbe', pos, pos_w, precision=hp) + pos_b).reshape(R, B * H, Hd)

    rw_q = (q.reshape(T, B, H, Hd) + r_w_bias).reshape(T, B * H, Hd)
    rr_q = (q.reshape(T, B, H, Hd) + r_r_bias).reshape(T, B * H, Hd)

    ac = scale * jnp.einsum('ibd,jbd->bij', rw_q, k, precision=hp)           # [BH,T,T]
    bd = scale * jnp.einsum('ibd,jbd->bij', rr_q, rk, precision=hp)          # [BH,T,R]

    BH = B * H
    zero_pad = jnp.zeros((BH, T, 1), bd.dtype)
    x_padded = jnp.concatenate([zero_pad, bd], axis=2)                        # [BH,T,R+1]
    bd_shift = x_padded.reshape(BH, R + 1, T)[:, 1:, :].reshape(BH, T, R)[:, :, :T]

    probs = jax.nn.softmax(ac + bd_shift, axis=-1)
    ctx = jnp.einsum('bij,jbd->ibd', probs, v, precision=hp).reshape(T, B, D)
    return jnp.einsum('tbd,ed->tbe', ctx, out_w, precision=hp) + out_b


if __name__ == "__main__":
    model_size, heads = 16, 1
    T, B = 8, 2
    D = model_size
    R = 2 * T - 1
    std = 0.02

    key = jax.random.PRNGKey(0)
    ks = jax.random.split(key, 7)
    x = jax.random.normal(ks[0], (T, B, D), jnp.float32)
    pos = jax.random.normal(ks[1], (R, B, D), jnp.float32)
    in_w = std * jax.random.normal(ks[2], (3 * D, D), jnp.float32)
    out_w = std * jax.random.normal(ks[3], (D, D), jnp.float32)
    pos_w = std * jax.random.normal(ks[4], (D, D), jnp.float32)
    in_b = jnp.zeros((3 * D,), jnp.float32)
    out_b = jnp.zeros((D,), jnp.float32)
    pos_b = jnp.zeros((D,), jnp.float32)
    r_w_bias = std * jax.random.normal(ks[5], (heads, D // heads), jnp.float32)
    r_r_bias = std * jax.random.normal(ks[6], (heads, D // heads), jnp.float32)

    out = relative_self_attention(x, pos, in_w, out_w, pos_w,
                                  in_b, out_b, pos_b, r_w_bias, r_r_bias, heads)
    out = jax.block_until_ready(out)

    ref = reference(x, pos, in_w, out_w, pos_w, in_b, out_b, pos_b,
                    r_w_bias, r_r_bias, heads)
    # tolerance covers MXU f32 accumulation-order differences vs the
    # HIGHEST-precision XLA reference (and f32 vs the f64 PyTorch softmax)
    np.testing.assert_allclose(np.asarray(out), np.asarray(ref), rtol=2e-3, atol=2e-5)
    print("KERNEL_OK")
</pallas_src>

<mosaic_0001>
module attributes {stable_mosaic.version = 11 : i64} {
  func.func @_rel_attn_kernel(%arg0: memref<16x16xf32, #tpu.memory_space<vmem>>, %arg1: memref<30x16xf32, #tpu.memory_space<vmem>>, %arg2: memref<48x16xf32, #tpu.memory_space<vmem>>, %arg3: memref<1x48xf32, #tpu.memory_space<vmem>>, %arg4: memref<16x16xf32, #tpu.memory_space<vmem>>, %arg5: memref<1x16xf32, #tpu.memory_space<vmem>>, %arg6: memref<16x16xf32, #tpu.memory_space<vmem>>, %arg7: memref<1x16xf32, #tpu.memory_space<vmem>>, %arg8: memref<1x16xf32, #tpu.memory_space<vmem>>, %arg9: memref<1x16xf32, #tpu.memory_space<vmem>>, %arg10: memref<16x16xf32, #tpu.memory_space<vmem>>, %arg11: memref<3x16x30xf32, #tpu.memory_space<vmem>>, %arg12: memref<16x16xf32, #tpu.memory_space<vmem>>) attributes {dimension_semantics = [], scalar_prefetch = 0 : i64, scratch_operands = 0 : i64, tpu.core_type = #tpu.core_type<tc>} {
    %c0 = arith.constant 0 : index
    %c0_0 = arith.constant 0 : index
    %0 = vector.load %arg0[%c0, %c0_0] : memref<16x16xf32, #tpu.memory_space<vmem>>, vector<16x16xf32>
    %c0_1 = arith.constant 0 : index
    %c0_2 = arith.constant 0 : index
    %1 = vector.load %arg1[%c0_1, %c0_2] : memref<30x16xf32, #tpu.memory_space<vmem>>, vector<30x16xf32>
    %c0_3 = arith.constant 0 : index
    %c0_4 = arith.constant 0 : index
    %2 = vector.load %arg2[%c0_3, %c0_4] : memref<48x16xf32, #tpu.memory_space<vmem>>, vector<48x16xf32>
    %cst = arith.constant dense<0.000000e+00> : vector<16x48xf32>
    %3 = tpu.matmul %0, %2, %cst {dimension_numbers = #tpu.dot_dimension_numbers<[1], [1], [0], [0], [0, 0, 1, 0], [], []>} : vector<16x16xf32>, vector<48x16xf32>, vector<16x48xf32> -> vector<16x48xf32>
    %c0_5 = arith.constant 0 : index
    %c0_6 = arith.constant 0 : index
    %4 = vector.load %arg3[%c0_5, %c0_6] : memref<1x48xf32, #tpu.memory_space<vmem>>, vector<1x48xf32>
    %5 = vector.broadcast %4 : vector<1x48xf32> to vector<16x48xf32>
    %6 = arith.addf %3, %5 : vector<16x48xf32>
    %c0_7 = arith.constant 0 : index
    %c0_8 = arith.constant 0 : index
    %7 = vector.load %arg4[%c0_7, %c0_8] : memref<16x16xf32, #tpu.memory_space<vmem>>, vector<16x16xf32>
    %cst_9 = arith.constant dense<0.000000e+00> : vector<30x16xf32>
    %8 = tpu.matmul %1, %7, %cst_9 {dimension_numbers = #tpu.dot_dimension_numbers<[1], [1], [0], [0], [0, 0, 1, 0], [], []>} : vector<30x16xf32>, vector<16x16xf32>, vector<30x16xf32> -> vector<30x16xf32>
    %c0_10 = arith.constant 0 : index
    %c0_11 = arith.constant 0 : index
    %9 = vector.load %arg5[%c0_10, %c0_11] : memref<1x16xf32, #tpu.memory_space<vmem>>, vector<1x16xf32>
    %10 = vector.broadcast %9 : vector<1x16xf32> to vector<30x16xf32>
    %11 = arith.addf %8, %10 : vector<30x16xf32>
    %c0_12 = arith.constant 0 : index
    %c0_13 = arith.constant 0 : index
    %12 = vector.load %arg10[%c0_12, %c0_13] : memref<16x16xf32, #tpu.memory_space<vmem>>, vector<16x16xf32>
    %c0_14 = arith.constant 0 : index
    %c0_15 = arith.constant 0 : index
    %13 = vector.load %arg8[%c0_14, %c0_15] : memref<1x16xf32, #tpu.memory_space<vmem>>, vector<1x16xf32>
    %c0_16 = arith.constant 0 : index
    %c0_17 = arith.constant 0 : index
    %14 = vector.load %arg9[%c0_16, %c0_17] : memref<1x16xf32, #tpu.memory_space<vmem>>, vector<1x16xf32>
    %15 = vector.extract_strided_slice %6 {offsets = [0, 0], sizes = [16, 16], strides = [1, 1]} : vector<16x48xf32> to vector<16x16xf32>
    %16 = vector.extract_strided_slice %6 {offsets = [0, 16], sizes = [16, 16], strides = [1, 1]} : vector<16x48xf32> to vector<16x16xf32>
    %17 = vector.extract_strided_slice %6 {offsets = [0, 32], sizes = [16, 16], strides = [1, 1]} : vector<16x48xf32> to vector<16x16xf32>
    %18 = vector.broadcast %13 : vector<1x16xf32> to vector<16x16xf32>
    %19 = arith.addf %15, %18 : vector<16x16xf32>
    %cst_18 = arith.constant 2.500000e-01 : f32
    %20 = vector.broadcast %cst_18 : f32 to vector<16x16xf32>
    %21 = arith.mulf %20, %19 : vector<16x16xf32>
    %22 = vector.broadcast %14 : vector<1x16xf32> to vector<16x16xf32>
    %23 = arith.addf %15, %22 : vector<16x16xf32>
    %cst_19 = arith.constant 2.500000e-01 : f32
    %24 = vector.broadcast %cst_19 : f32 to vector<16x16xf32>
    %25 = arith.mulf %24, %23 : vector<16x16xf32>
    %cst_20 = arith.constant dense<0.000000e+00> : vector<16x16xf32>
    %26 = tpu.matmul %21, %16, %cst_20 {dimension_numbers = #tpu.dot_dimension_numbers<[1], [1], [0], [0], [0, 0, 1, 0], [], []>} : vector<16x16xf32>, vector<16x16xf32>, vector<16x16xf32> -> vector<16x16xf32>
    %cst_21 = arith.constant dense<0.000000e+00> : vector<16x30xf32>
    %27 = tpu.matmul %25, %11, %cst_21 {dimension_numbers = #tpu.dot_dimension_numbers<[1], [1], [0], [0], [0, 0, 1, 0], [], []>} : vector<16x16xf32>, vector<30x16xf32>, vector<16x30xf32> -> vector<16x30xf32>
    %28 = vector.extract_strided_slice %27 {offsets = [0, 2], sizes = [16, 28], strides = [1, 1]} : vector<16x30xf32> to vector<16x28xf32>
    %29 = vector.extract_strided_slice %27 {offsets = [0, 0], sizes = [16, 2], strides = [1, 1]} : vector<16x30xf32> to vector<16x2xf32>
    %30 = tpu.concatenate %28, %29 in 1 : vector<16x28xf32>, vector<16x2xf32> -> vector<16x30xf32>
    %c0_22 = arith.constant 0 : index
    %c0_23 = arith.constant 0 : index
    %c0_24 = arith.constant 0 : index
    %31 = vector.load %arg11[%c0_22, %c0_23, %c0_24] : memref<3x16x30xf32, #tpu.memory_space<vmem>>, vector<1x16x30xf32>
    %32 = vector.shape_cast %31 : vector<1x16x30xf32> to vector<16x30xf32>
    %cst_25 = arith.constant 5.000000e-01 : f32
    %33 = vector.broadcast %cst_25 : f32 to vector<16x30xf32>
    %34 = arith.cmpf ogt, %32, %33 : vector<16x30xf32>
    %35 = arith.select %34, %30, %27 : vector<16x30xi1>, vector<16x30xf32>
    %36 = vector.extract_strided_slice %35 {offsets = [0, 4], sizes = [16, 26], strides = [1, 1]} : vector<16x30xf32> to vector<16x26xf32>
    %37 = vector.extract_strided_slice %35 {offsets = [0, 0], sizes = [16, 4], strides = [1, 1]} : vector<16x30xf32> to vector<16x4xf32>
    %38 = tpu.concatenate %36, %37 in 1 : vector<16x26xf32>, vector<16x4xf32> -> vector<16x30xf32>
    %c1 = arith.constant 1 : index
    %c0_26 = arith.constant 0 : index
    %c0_27 = arith.constant 0 : index
    %39 = vector.load %arg11[%c1, %c0_26, %c0_27] : memref<3x16x30xf32, #tpu.memory_space<vmem>>, vector<1x16x30xf32>
    %40 = vector.shape_cast %39 : vector<1x16x30xf32> to vector<16x30xf32>
    %cst_28 = arith.constant 5.000000e-01 : f32
    %41 = vector.broadcast %cst_28 : f32 to vector<16x30xf32>
    %42 = arith.cmpf ogt, %40, %41 : vector<16x30xf32>
    %43 = arith.select %42, %38, %35 : vector<16x30xi1>, vector<16x30xf32>
    %44 = vector.extract_strided_slice %43 {offsets = [0, 8], sizes = [16, 22], strides = [1, 1]} : vector<16x30xf32> to vector<16x22xf32>
    %45 = vector.extract_strided_slice %43 {offsets = [0, 0], sizes = [16, 8], strides = [1, 1]} : vector<16x30xf32> to vector<16x8xf32>
    %46 = tpu.concatenate %44, %45 in 1 : vector<16x22xf32>, vector<16x8xf32> -> vector<16x30xf32>
    %c2 = arith.constant 2 : index
    %c0_29 = arith.constant 0 : index
    %c0_30 = arith.constant 0 : index
    %47 = vector.load %arg11[%c2, %c0_29, %c0_30] : memref<3x16x30xf32, #tpu.memory_space<vmem>>, vector<1x16x30xf32>
    %48 = vector.shape_cast %47 : vector<1x16x30xf32> to vector<16x30xf32>
    %cst_31 = arith.constant 5.000000e-01 : f32
    %49 = vector.broadcast %cst_31 : f32 to vector<16x30xf32>
    %50 = arith.cmpf ogt, %48, %49 : vector<16x30xf32>
    %51 = arith.select %50, %46, %43 : vector<16x30xi1>, vector<16x30xf32>
    %52 = vector.extract_strided_slice %51 {offsets = [0, 0], sizes = [16, 16], strides = [1, 1]} : vector<16x30xf32> to vector<16x16xf32>
    %53 = arith.addf %26, %52 : vector<16x16xf32>
    %54 = arith.addf %53, %12 : vector<16x16xf32>
    %cst_32 = arith.constant dense<0xFF800000> : vector<16xf32>
    %55 = vector.multi_reduction <maximumf>, %54, %cst_32 [1] : vector<16x16xf32> to vector<16xf32>
    %56 = vector.shape_cast %55 : vector<16xf32> to vector<16x1xf32>
    %57 = vector.broadcast %56 : vector<16x1xf32> to vector<16x16xf32>
    %58 = arith.subf %54, %57 : vector<16x16xf32>
    %59 = math.exp %58 : vector<16x16xf32>
    %cst_33 = arith.constant dense<0.000000e+00> : vector<16xf32>
    %60 = vector.multi_reduction <add>, %59, %cst_33 [1] : vector<16x16xf32> to vector<16xf32>
    %61 = vector.shape_cast %60 : vector<16xf32> to vector<16x1xf32>
    %62 = tpu.reciprocal %61 : vector<16x1xf32> -> vector<16x1xf32>
    %63 = vector.broadcast %62 : vector<16x1xf32> to vector<16x16xf32>
    %64 = arith.mulf %59, %63 : vector<16x16xf32>
    %cst_34 = arith.constant dense<0.000000e+00> : vector<16x16xf32>
    %65 = tpu.matmul %64, %17, %cst_34 {dimension_numbers = #tpu.dot_dimension_numbers<[1], [0], [0], [1], [0, 0, 1, 1], [], []>} : vector<16x16xf32>, vector<16x16xf32>, vector<16x16xf32> -> vector<16x16xf32>
    %c0_35 = arith.constant 0 : index
    %c0_36 = arith.constant 0 : index
    %66 = vector.load %arg6[%c0_35, %c0_36] : memref<16x16xf32, #tpu.memory_space<vmem>>, vector<16x16xf32>
    %cst_37 = arith.constant dense<0.000000e+00> : vector<16x16xf32>
    %67 = tpu.matmul %65, %66, %cst_37 {dimension_numbers = #tpu.dot_dimension_numbers<[1], [1], [0], [0], [0, 0, 1, 0], [], []>} : vector<16x16xf32>, vector<16x16xf32>, vector<16x16xf32> -> vector<16x16xf32>
    %c0_38 = arith.constant 0 : index
    %c0_39 = arith.constant 0 : index
    %68 = vector.load %arg7[%c0_38, %c0_39] : memref<1x16xf32, #tpu.memory_space<vmem>>, vector<1x16xf32>
    %69 = vector.broadcast %68 : vector<1x16xf32> to vector<16x16xf32>
    %70 = arith.addf %67, %69 : vector<16x16xf32>
    %c0_40 = arith.constant 0 : index
    %c0_41 = arith.constant 0 : index
    %71 = vector.load %arg12[%c0_40, %c0_41] : memref<16x16xf32, #tpu.memory_space<vmem>>, vector<16x16xf32>
    tpu.vector_store %arg12[%c0_40, %c0_41], %70 {strides = array<i32>} : memref<16x16xf32, #tpu.memory_space<vmem>>, vector<16x16xf32>,
    return
  }
}

</mosaic_0001>

<bundles_post_ra>
// kernel: tpu_custom_call.1
= control target key start
LH: loop header
LB: loop body
LE: loop exit
PB: predicated region body
PF: predicated region fallthrough
CT: control target
= control target key end

     0   :  { %vm61_vm0 = vcmask 130048   ;;  %s1247_s0 = inlined_call_operand.vmem [shape: f32[16,16], index: 0, kind: input, shape index: {}]   ;;  %s1248_s1 = inlined_call_operand.vmem [shape: f32[30,16], index: 1, kind: input, shape index: {}]   ;;  %s1249_s2 = inlined_call_operand.vmem [shape: f32[48,16], index: 2, kind: input, shape index: {}]   ;;  %s1250_s3 = inlined_call_operand.vmem [shape: f32[1,48], index: 3, kind: input, shape index: {}]   ;;  %s1251_s4 = inlined_call_operand.vmem [shape: f32[16,16], index: 4, kind: input, shape index: {}]   ;;  %s1252_s5 = inlined_call_operand.vmem [shape: f32[1,16], index: 5, kind: input, shape index: {}]   ;;  %s1253_s6 = inlined_call_operand.vmem [shape: f32[16,16], index: 6, kind: input, shape index: {}]   ;;  %s1254_s7 = inlined_call_operand.vmem [shape: f32[1,16], index: 7, kind: input, shape index: {}]   ;;  %s1255_s8 = inlined_call_operand.vmem [shape: f32[1,16], index: 8, kind: input, shape index: {}]   ;;  %s1256_s9 = inlined_call_operand.vmem [shape: f32[1,16], index: 9, kind: input, shape index: {}]   ;;  %s1257_s10 = inlined_call_operand.vmem [shape: f32[16,16], index: 10, kind: input, shape index: {}]   ;;  %s1258_s11 = inlined_call_operand.vmem [shape: f32[3,16,30], index: 11, kind: input, shape index: {}]   ;;  %s1259_s12 = inlined_call_operand.hbm [shape: f32[16,16], index: 12, kind: output, shape index: {}]  }
   0x1   :  { %v48_v0 = vld [vmem:[%s1249_s2] sm:$0xff]  ;;  %v49_v1 = vld [vmem:[%s1249_s2 + $0x8] sm:$0xff]  ;;  %vm1097_vm1 = vmpackc.low %vm61_vm0, %vm61_vm0 }
   0x2   :  { %v161_v2 = vld [vmem:[%s1251_s4] sm:$0xff]  ;;  %v905_v3 = vpack.c.bf16 %v49_v1, %v48_v0  ;;  %v162_v5 = vld [vmem:[%s1251_s4 + $0x8] sm:$0xff]  ;;  %v50_v6 = vld [vmem:[%s1249_s2 + $0x10] sm:$0xff] }
   0x3   :  { %v923_v7 = vpack.c.bf16 %v162_v5, %v161_v2  ;;  %v51_v8 = vld [vmem:[%s1249_s2 + $0x18] sm:$0xff]  ;;  %v44_v9 = vld [vmem:[%s1248_s1] sm:$0xff] }
   0x4   :  { %907 = vmatprep.subr.msk.bf16.mxu0 %vm1097_vm1, %v905_v3  ;;  %v911_v10 = vpack.c.bf16 %v51_v8, %v50_v6  ;;  %867 = vmatprep.mubr.msk.f32.mxu1 %vm61_vm0, %v44_v9  ;;  %v42_v11 = vld [vmem:[%s1247_s0] sm:$0xff] }
   0x5   :  { %910 = vmatpush3.bf16.xpose.msk.msra.mxu0 %vm1097_vm1, %v905_v3  ;;  %925 = vmatprep.subr.msk.bf16.mxu1 %vm1097_vm1, %v923_v7 }
   0x6   :  { %928 = vmatpush3.bf16.xpose.msk.msra.mxu1 %vm1097_vm1, %v923_v7  ;;  %913 = vmatprep.subr.msk.bf16.mxu0 %vm1097_vm1, %v911_v10 }
   0x7   :  { %17 = vsyncpa [#allocation3], 0  ;;  %v52_v12 = vld [vmem:[%s1249_s2 + $0x20] sm:$0xff]  ;;  %v53_v13 = vld [vmem:[%s1249_s2 + $0x28] sm:$0xff]  ;;  %860 = vmatprep.mubr.msk.f32.mxu0 %vm61_vm0, %v42_v11  ;;  %vm404_vm2 = vcmask 228352   ;;  %s1013_s19 = smov 26  }
   0x8   :  { %v45_v14 = vld [vmem:[%s1248_s1 + $0x8] sm:$0xff]  ;;  %v917_v15 = vpack.c.bf16 %v53_v13, %v52_v12  ;;  %v46_v16 = vld [vmem:[%s1248_s1 + $0x10] sm:$0xff]  ;;  %v47_v17 = vld [vmem:[%s1248_s1 + $0x18] sm:$0x3f]  ;;  %s1014_s20 = smov 124   ;;  %vm427_vm5 = vcmask 211968  }
   0x9   :  { %v43_v18 = vld [vmem:[%s1247_s0 + $0x8] sm:$0xff]  ;;  %v786_v19 = vld [vmem:[%s1252_s5] ss:$0 sm:$0xff]  ;;  %v801_v0 = vld [vmem:[%s1258_s11 + $0x10] sm:$0xff]  ;;  %s1015_s25 = smov 22   ;;  %s1016_s2 = smov 120  }
   0xa   :  { %v777_v30 = vld [vmem:[%s1250_s3] ss:$0 sm:$0xff]  ;;  %s1010_s3 = smov 112   ;;  %v408_v55 = vld [vmem:[%s1258_s11 + $0x8] sm:$0xff]  ;;  %vm433_vm6 = vcmp.gt.f32.partialorder %v801_v0, 0.5  ;;  %v802_v3 = vld [vmem:[%s1258_s11 + $0x18] sm:$0xff] }
   0xb   :  { %v793_v32 = vld [vmem:[%s1255_s8] ss:$0 sm:$0xff]  ;;  %s1011_s8 = smov 28   ;;  %vm410_vm4 = vcmp.gt.f32.partialorder %v408_v55, 0.5  ;;  %vm434_vm7 = vcmp.gt.f32.partialorder %v802_v3, 0.5  ;;  %vm451_vm8 = vcmask 179200  }
   0xc   :  { %v794_v33 = vld [vmem:[%s1256_s9] ss:$0 sm:$0xff]  ;;  %s1012_s9 = smov 126  }
   0xd   :  { %916 = vmatpush3.bf16.xpose.msk.msra.mxu0 %vm1097_vm1, %v911_v10  ;;  %868 = vmatmul.mubr.msk.f32.vlgmr.msra.gmra.mrb[0].mxu1 %vm61_vm0, %v45_v14  ;;  %v407_v52 = vld [vmem:[%s1258_s11] sm:$0xff]  ;;  %v804_v14 = vld [vmem:[%s1258_s11 + $0x28] sm:$0xff] }
   0xe   :  { %919 = vmatprep.subr.msk.bf16.mxu0 %vm1097_vm1, %v917_v15  ;;  %870 = vmatprep.mubr.msk.f32.mxu1 %vm61_vm0, %v46_v16  ;;  %vm409_vm3 = vcmp.gt.f32.partialorder %v407_v52, 0.5  ;;  %v803_v11 = vld [vmem:[%s1258_s11 + $0x20] sm:$0xff]  ;;  %vm458_vm10 = vcmp.gt.f32.partialorder %v804_v14, 0.5 }
   0xf   :  { %vm457_vm9 = vcmp.gt.f32.partialorder %v803_v11, 0.5 }
  0x11   :  { %871 = vmatmul.mubr.msk.f32.gmra.mrb[2].mxu1 %vm61_vm0, %v47_v17  ;;  %v273_v17 = vld [vmem:[%s1257_s10] sm:$0xff] }
  0x15   :  { %922 = vmatpush3.bf16.xpose.msk.msra.mxu0 %vm1097_vm1, %v917_v15 }
  0x1c   :  { %861 = vmatmul.mubr.msk.f32.vlgmr.msra.gmra.mrb[0].mxu0 %vm61_vm0, %v43_v18 }
  0xe0   :  { %v869_v20 = vpop.f32.mrb[0].mxu1 }
  0xe1   :  { %v260_v21 = vadd.f32 %v869_v20, %v786_v19  ;;  %v254_v22 = vpop.f32.mrb[1].mxu1 }
  0xe2   :  { %v255_v23 = vadd.f32 %v786_v19, %v254_v22 }
  0xe4   :  { %v929_v24 = vpack.c.bf16 %v260_v21, %v255_v23  ;;  %v872_v25 = vpop.f32.mrb[2].mxu1 }
  0xe5   :  { %v270_v26 = vadd.f32 %v872_v25, %v786_v19  ;;  %v264_v27 = vpop.f32.mrb[3].mxu1 }
  0xe6   :  { %931 = vmatprep.subr.msk.bf16.mxu1 %vm1097_vm1, %v929_v24  ;;  %v265_v28 = vadd.f32 %v786_v19, %v264_v27 }
  0xe7   :  { %934 = vmatpush3.bf16.xpose.msk.msra.mxu1 %vm1097_vm1, %v929_v24  ;;  %v274_v24 = vld [vmem:[%s1257_s10 + $0x8] sm:$0xff]  ;;  %s1017_s10 = smov 96  }
  0xe8   :  { %v935_v29 = vpack.c.bf16 %v270_v26, %v265_v28 }
  0xea   :  { %937 = vmatprep.subr.msk.bf16.mxu1 %vm1097_vm1, %v935_v29 }
  0xef   :  { %v862_v31 = vpop.f32.mrb[0].mxu0  ;;  %940 = vmatpush3.bf16.xpose.msk.msra.mxu1 %vm1097_vm1, %v935_v29 }
  0xf0   :  { %v158_v34 = vadd.f32 %v862_v31, %v777_v30  ;;  %v152_v35 = vpop.f32.mrb[1].mxu0 }
  0xf1   :  { %v153_v36 = vadd.f32 %v777_v30, %v152_v35 }
  0xf2   :  { %v284_v37 = vadd.f32 %v793_v32, %v158_v34  ;;  %v294_v38 = vadd.f32 %v794_v33, %v158_v34 }
  0xf3   :  { %v1176_v39 = vpack.i.bf16 %v158_v34, %v153_v36  ;;  %v293_v40 = vadd.f32 %v794_v33, %v153_v36  ;;  %v283_v41 = vadd.f32 %v793_v32, %v153_v36 }
  0xf4   :  { %v296_v44 = vmul.f32 0.25, %v294_v38  ;;  %v286_v49 = vmul.f32 0.25, %v284_v37 }
  0xf5   :  { %969 = vrot.lane.b32.xlu0 %v1176_v39, %s1010_s3  ;;  %v295_v42 = vmul.f32 0.25, %v293_v40  ;;  %v285_v43 = vmul.f32 0.25, %v283_v41 }
  0xf7   :  { %881 = vmatprep.mubr.msk.f32.mxu1 %vm61_vm0, %v295_v42  ;;  %888 = vmatprep.mubr.msk.f32.mxu0 %vm61_vm0, %v285_v43  ;;  %v663_v43 = vld [vmem:[%s1253_s6] sm:$0xff] }
  0xf8   :  { %882 = vmatmul.mubr.msk.f32.vlgmr.msra.gmra.mrb[4].mxu1 %vm61_vm0, %v296_v44  ;;  %v664_v44 = vld [vmem:[%s1253_s6 + $0x8] sm:$0xff] }
 0x167   :  { %v970_v45 = vpop.permute.xlu0 %969 }
 0x168   :  { %v972_v46 = vunpack.i.h.bf16 %v970_v45  ;;  %v971_v47 = vunpack.i.l.bf16 %v970_v45 }
 0x16a   :  { %v941_v48 = vpack.c.bf16 %v972_v46, %v971_v47 }
 0x16c   :  { %943 = vmatprep.subr.msk.bf16.mxu0 %vm1097_vm1, %v941_v48 }
 0x16d   :  { %946 = vmatpush3.bf16.xpose.msk.msra.mxu0 %vm1097_vm1, %v941_v48  ;;  %v951_v48 = vpack.c.bf16 %v664_v44, %v663_v43 }
 0x174   :  { %889 = vmatmul.mubr.msk.f32.vlgmr.msra.gmra.mrb[2].mxu0 %vm61_vm0, %v286_v49 }
 0x1cb   :  { %v883_v50 = vpop.f32.mrb[4].mxu1 }
 0x1cc   :  { %v381_v51 = vpop.f32.mrb[5].mxu1 }
 0x1cd   :  { %398 = vrot.lane.b32.xlu1 %v381_v51, %s1011_s8  ;;  %392 = vrot.lane.b32.xlu0 %v381_v51, %s1012_s9 }
 0x1d1   :  { %394 = vrot.lane.b32.xlu1 %v883_v50, %s1012_s9  ;;  %400 = vrot.lane.b32.xlu0 %v883_v50, %s1011_s8  ;;  %s1018_s8 = smov [#allocation2]  }
 0x1d2   :  { %s766_s9 = sshll.u32 %s1018_s8, 4  ;;  %s767_s9 = int_to_ptr.vmem [resolvable:$true] %s766_s9 }
 0x1d3   :  { %s986_s16 = scalar_lea.vmem %s767_s9, 256  ;;  %p991_p1 = scmp.lt.s32.totalorder %s767_s9, %s767_s9 }
 0x1d4   :  { %p987_p0 = scmp.ne.s32.totalorder %s767_s9, %s986_s16  ;;  %p992_p2 = scmp.lt.s32.totalorder %s986_s16, %s986_s16 }
 0x1d6   :  { %p993_p3 = por %p992_p2, %p991_p1 }
 0x1d8   :  { %p994_p4 = pnand %p993_p3, %p987_p0 }
 0x23f   :  { %v399_v53 = vpop.permute.xlu1 %398  ;;  %v393_v54 = vpop.permute.xlu0 %392 }
 0x240   :  { %v405_v56 = vsel %vm404_vm2, %v393_v54, %v399_v53  ;;  %v811_v54 = vld [vmem:[%s1254_s7] ss:$0 sm:$0xff] }
 0x241   :  { %v411_v57 = vsel %vm409_vm3, %v405_v56, %v381_v51 }
 0x242   :  { %421 = vrot.lane.b32.xlu0 %v411_v57, %s1013_s19  ;;  %415 = vrot.lane.b32.xlu1 %v411_v57, %s1014_s20 }
 0x243   :  { %v395_v58 = vpop.permute.xlu1 %394  ;;  %v401_v59 = vpop.permute.xlu0 %400 }
 0x244   :  { %v406_v60 = vsel %vm404_vm2, %v395_v58, %v401_v59 }
 0x245   :  { %v412_v61 = vsel %vm410_vm4, %v406_v60, %v883_v50 }
 0x246   :  { %423 = vrot.lane.b32.xlu0 %v412_v61, %s1013_s19  ;;  %417 = vrot.lane.b32.xlu1 %v412_v61, %s1014_s20 }
 0x247   :  { %v890_v62 = vpop.f32.mrb[2].mxu0 }
 0x248   :  { %v543_v63 = vpop.f32.mrb[3].mxu0 }
 0x2b4   :  { %v416_v1 = vpop.permute.xlu1 %415  ;;  %v422_v2 = vpop.permute.xlu0 %421 }
 0x2b5   :  { %v428_v5 = vsel %vm427_vm5, %v416_v1, %v422_v2 }
 0x2b6   :  { %v435_v6 = vsel %vm433_vm6, %v428_v5, %v411_v57 }
 0x2b7   :  { %445 = vrot.lane.b32.xlu0 %v435_v6, %s1015_s25  ;;  %439 = vrot.lane.b32.xlu1 %v435_v6, %s1016_s2 }
 0x2b8   :  { %v418_v7 = vpop.permute.xlu1 %417  ;;  %v424_v8 = vpop.permute.xlu0 %423 }
 0x2b9   :  { %v429_v9 = vsel %vm427_vm5, %v418_v7, %v424_v8 }
 0x2ba   :  { %v436_v10 = vsel %vm434_vm7, %v429_v9, %v412_v61 }
 0x2bb   :  { %447 = vrot.lane.b32.xlu0 %v436_v10, %s1015_s25  ;;  %441 = vrot.lane.b32.xlu1 %v436_v10, %s1016_s2 }
 0x329   :  { %v440_v12 = vpop.permute.xlu1 %439  ;;  %v446_v13 = vpop.permute.xlu0 %445 }
 0x32a   :  { %v452_v15 = vsel %vm451_vm8, %v440_v12, %v446_v13 }
 0x32b   :  { %v459_v16 = vsel %vm457_vm9, %v452_v15, %v435_v6 }
 0x32c   :  { %v544_v18 = vadd.f32 %v543_v63, %v459_v16 }
 0x32d   :  { %v442_v19 = vpop.permute.xlu1 %441  ;;  %v448_v20 = vpop.permute.xlu0 %447 }
 0x32e   :  { %v453_v21 = vsel %vm451_vm8, %v442_v19, %v448_v20  ;;  %v552_v22 = vadd.f32 %v544_v18, %v273_v17 }
 0x32f   :  { %v460_v23 = vsel %vm458_vm10, %v453_v21, %v436_v10 }
 0x330   :  { %v554_v25 = vsel %vm61_vm0, %v552_v22, -inf  ;;  %v549_v26 = vadd.f32 %v890_v62, %v460_v23 }
 0x331   :  { %555 = vmax.xlane.f32.xlu1 %v554_v25 }
 0x332   :  { %v553_v27 = vadd.f32 %v549_v26, %v274_v24 }
 0x334   :  { %v557_v28 = vsel %vm61_vm0, %v553_v27, -inf }
 0x335   :  { %558 = vmax.xlane.f32.xlu0 %v557_v28 }
 0x3be   :  { %v556_v29 = vpop.xlane.xlu1 %555 }
 0x3bf   :  { %v560_v30 = vsub.f32 %v552_v22, %v556_v29 }
 0x3c1   :  { %v562_v31 = vmul.f32 1.442695, %v560_v30 }
 0x3c2   :  { %v559_v32 = vpop.xlane.xlu0 %558 }
 0x3c3   :  { %978 = vpow2.f32 %v562_v31  ;;  %v561_v33 = vsub.f32 %v553_v27, %v559_v32 }
 0x3c5   :  { %v564_v34 = vmul.f32 1.442695, %v561_v33 }
 0x3c7   :  { %980 = vpow2.f32 %v564_v34 }
 0x3cd   :  { %v979_v35 = vpop.eup %978 }
 0x3ce   :  { %v566_v36 = vsel %vm61_vm0, %v979_v35, 0.0 }
 0x3cf   :  { %567 = vadd.xlane.f32.xlu0 %v566_v36 }
 0x3d1   :  { %v981_v37 = vpop.eup %980 }
 0x3d2   :  { %v569_v38 = vsel %vm61_vm0, %v981_v37, 0.0 }
 0x3d3   :  { %570 = vadd.xlane.f32.xlu1 %v569_v38 }
 0x3e5   :  { %974 = vrot.lane.b32.xlu0 %v1176_v39, %s1017_s10 }
 0x45c   :  { %v568_v40 = vpop.xlane.xlu0 %567 }
 0x45d   :  { %982 = vrcp.f32 %v568_v40 }
 0x460   :  { %v975_v41 = vpop.permute.xlu0 %974  ;;  %v571_v42 = vpop.xlane.xlu1 %570 }
 0x461   :  { %v977_v45 = vunpack.i.h.bf16 %v975_v41  ;;  %v976_v46 = vunpack.i.l.bf16 %v975_v41  ;;  %984 = vrcp.f32 %v571_v42 }
 0x463   :  { %v947_v47 = vpack.c.bf16 %v977_v45, %v976_v46 }
 0x465   :  { %948 = vmatprep.subr.bf16.mxu1 %v947_v47 }
 0x466   :  { %950 = vmatpush3.bf16.msra.mxu1 %v947_v47 }
 0x467   :  { %v983_v39 = vpop.eup %982  ;;  %953 = vmatprep.subr.msk.bf16.mxu1 %vm1097_vm1, %v951_v48 }
 0x468   :  { %v574_v49 = vmul.f32 %v983_v39, %v979_v35 }
 0x46a   :  { %895 = vmatprep.mubr.msk.f32.mxu1 %vm61_vm0, %v574_v49 }
 0x46b   :  { %v985_v50 = vpop.eup %984 }
 0x46c   :  { %v575_v51 = vmul.f32 %v985_v50, %v981_v37 }
 0x46e   :  { %896 = vmatmul.mubr.msk.f32.vlgmr.msra.gmra.mrb[6].mxu1 %vm61_vm0, %v575_v51 }
 0x46f   :  { %956 = vmatpush3.bf16.xpose.msk.msra.mxu1 %vm1097_vm1, %v951_v48 }
 0x541   :  { %v897_v52 = vpop.f32.mrb[6].mxu1 }
 0x542   :  { %v654_v53 = vpop.f32.mrb[7].mxu1 }
 0x543   :  { %902 = vmatprep.mubr.msk.f32.mxu1 %vm61_vm0, %v654_v53 }
 0x544   :  { %903 = vmatmul.mubr.msk.f32.vlgmr.msra.gmra.mrb[8].mxu1 %vm61_vm0, %v897_v52 }
 0x617   :  { %v904_v55 = vpop.f32.mrb[8].mxu1 }
 0x618   :  { %v756_v56 = vadd.f32 %v904_v55, %v811_v54  ;;  %v750_v57 = vpop.f32.mrb[9].mxu1 }
 0x619   :  { %v751_v58 = vadd.f32 %v811_v54, %v750_v57 }
 0x61a   :  { %760 = vst.msk [vmem:[#allocation2 + $0x8] sm:$0xff] %vm61_vm0, %v756_v56 }
 0x61b   :  { %759 = vst.msk [vmem:[#allocation2] sm:$0xff] %vm61_vm0, %v751_v58 }
 0x61c   :  { %997 = shalt.err (!%p994_p4)
}
 0x61d   :  { %s998_s17 = scalar_lea.hbm %s1259_s12, 256 }
 0x61e   :  { %p999_p5 = scmp.ne.s32.totalorder %s1259_s12, %s998_s17  ;;  %p1002_p6 = scmp.lt.u32.totalorder %s998_s17, %s1259_s12 }
 0x620   :  { %p1004_p7 = pnand %p1002_p6, %p999_p5 }
 0x622   :  { %1007 = shalt.err (!%p1004_p7)
}
 0x623   :  { %s1019_s22 = smov 128   ;;  %s1020_s23 = smov 8  }
 0x624   :  { %772 = dma.vmem_to_hbm [thread:$0]  %s767_s9, 256, %s1259_s12, [#allocation3], %s1019_s22, %s1019_s22, %s1020_s23  }
 0x625   :  { %1008 = dma.done.wait [#allocation3], 256  }
 0x626   :  { %1009 = vsyncadd [#allocation3], 4294967040 }
 0x627   :  { %776 = vsyncpa [#allocation3], 1 }

</bundles_post_ra>
